<compile_context>
chip_gen: v7x
topology: tpu7x:2x2x1
jax: 0.10.0
libtpu: 0.0.40
codegen_flags: <defaults>
</compile_context>

<pallas_src>
import functools

import jax
import jax.numpy as jnp
from jax.experimental import pallas as pl
from jax.experimental.pallas import tpu as pltpu


# ------------------------------ kernels -------------------------------------


def _center_tile_kernel(x_ref, o_ref, *, inv_len: float, transpose_out: bool):
    """Subtract the mean along the reduced axis from one f32 tile.

    doppler: x_ref (N, TF)  -> mean over axis 0 (sublanes), write (N, TF).
    range:   x_ref (TN, M)  -> mean over axis 1 (lanes), write transposed (M, TN).
    """
    x = x_ref[...]
    if transpose_out:
        mean = jnp.sum(x, axis=1, keepdims=True) * inv_len    # (TN, 1)
        o_ref[...] = jnp.transpose(x - mean, (1, 0))          # (M, TN)
    else:
        mean = jnp.sum(x, axis=0, keepdims=True) * inv_len    # (1, TF)
        o_ref[...] = x - mean


def _fallback_kernel(xr_ref, xi_ref, o_ref, *, inv_len: float):
    """Whole-(S, D) per-batch fallback (any shape): mean over S, concat re/im."""
    xr = xr_ref[...]
    xi = xi_ref[...]
    d = xr.shape[2]
    o_ref[:, :, :d] = xr - jnp.sum(xr, axis=1, keepdims=True) * inv_len
    o_ref[:, :, d:] = xi - jnp.sum(xi, axis=1, keepdims=True) * inv_len


# ------------------------------ wrappers ------------------------------------


def _pick_feature_tile(feat: int, other: int, target_elems: int = 1 << 19):
    """Largest multiple-of-128 divisor of `feat` whose (other x tile) input tile
    stays under ~target_elems f32 elements (~2 MiB). None if no such divisor."""
    divisors = [t for t in range(128, feat + 1, 128) if feat % t == 0]
    if not divisors:
        return None
    budget = max(128, target_elems // max(other, 1))
    fitting = [t for t in divisors if t <= budget]
    return max(fitting) if fitting else min(divisors)


def _radar_preproc_tiled(xri: jax.Array, detection_type: str, tile: int) -> jax.Array:
    """Optimized path. xri: (B, 2, N, M) float32 (stacked real/imag planes)."""
    b, _, n, m = xri.shape

    if detection_type == "range":
        # Output (B, M, 2N): reduce over M (lane axis), transpose tiles in-VMEM.
        n_tiles = n // tile
        grid = (b, 2, n_tiles)
        in_spec = pl.BlockSpec(
            (pl.Squeezed(), pl.Squeezed(), tile, m),
            lambda bi, c, t: (bi, c, t, 0))
        out_shape = jax.ShapeDtypeStruct((b, m, 2 * n), jnp.float32)
        out_spec = pl.BlockSpec(
            (pl.Squeezed(), m, tile),
            lambda bi, c, t: (bi, 0, c * n_tiles + t))
        kernel = functools.partial(
            _center_tile_kernel, inv_len=1.0 / m, transpose_out=True)
    else:
        # Output (B, N, 2M): reduce over N (sublane axis).
        m_tiles = m // tile
        grid = (b, 2, m_tiles)
        in_spec = pl.BlockSpec(
            (pl.Squeezed(), pl.Squeezed(), n, tile),
            lambda bi, c, t: (bi, c, 0, t))
        out_shape = jax.ShapeDtypeStruct((b, n, 2 * m), jnp.float32)
        out_spec = pl.BlockSpec(
            (pl.Squeezed(), n, tile),
            lambda bi, c, t: (bi, 0, c * m_tiles + t))
        kernel = functools.partial(
            _center_tile_kernel, inv_len=1.0 / n, transpose_out=False)

    total_elems = b * 2 * n * m
    return pl.pallas_call(
        kernel,
        out_shape=out_shape,
        grid_spec=pltpu.PrefetchScalarGridSpec(
            num_scalar_prefetch=0,
            grid=grid,
            in_specs=[in_spec],
            out_specs=out_spec),
        compiler_params=pltpu.CompilerParams(
            dimension_semantics=("parallel", "parallel", "parallel")),
        cost_estimate=pl.CostEstimate(
            flops=3 * total_elems,
            transcendentals=0,
            bytes_accessed=8 * total_elems),
    )(xri)


def _radar_preproc_fallback(xc: jax.Array, detection_type: str) -> jax.Array:
    """General-shape fallback: layout glue in XLA, whole-slice blocks per batch."""
    xr = jnp.real(xc)
    xi = jnp.imag(xc)
    if detection_type == "range":
        xr = jnp.transpose(xr, (0, 2, 1))
        xi = jnp.transpose(xi, (0, 2, 1))
    b, s, d = xr.shape
    kernel = functools.partial(_fallback_kernel, inv_len=1.0 / s)
    return pl.pallas_call(
        kernel,
        out_shape=jax.ShapeDtypeStruct((b, s, 2 * d), jnp.float32),
        grid_spec=pltpu.PrefetchScalarGridSpec(
            num_scalar_prefetch=0,
            grid=(b,),
            in_specs=[pl.BlockSpec((1, s, d), lambda bi: (bi, 0, 0)),
                      pl.BlockSpec((1, s, d), lambda bi: (bi, 0, 0))],
            out_specs=pl.BlockSpec((1, s, 2 * d), lambda bi: (bi, 0, 0))),
        compiler_params=pltpu.CompilerParams(
            dimension_semantics=("parallel",)),
    )(xr, xi)


def radar_preprocessing(x: jax.Array, detection_type: str = "range") -> jax.Array:
    """JAX/Pallas equivalent of RadarPreprocessing.forward.

    Args:
      x: complex64 / complex128 array of shape (B, N, M).
      detection_type: "range" or "doppler".
    Returns:
      float32 array: range -> (B, M, 2*N); doppler -> (B, N, 2*M).
    """
    assert detection_type in ("range", "doppler")
    assert jnp.issubdtype(x.dtype, jnp.complexfloating)
    # TPU has no native f64 vector path: compute complex128 inputs in float32.
    xc = x.astype(jnp.complex64)
    b, n, m = xc.shape

    if detection_type == "range":
        feat, other = n, m
        aligned = (m % 128 == 0)       # keep the in-VMEM tile transpose aligned
    else:
        feat, other = m, n
        aligned = True

    tile = _pick_feature_tile(feat, other) if aligned else None
    if tile is None:
        return _radar_preproc_fallback(xc, detection_type)

    # Single fused XLA producer pass: read x once, emit stacked (real, imag)
    # planes once; the kernel consumes them exactly once (no extra transpose
    # pass, no separate real/imag round trips).
    xri = jnp.stack([jnp.real(xc), jnp.imag(xc)], axis=1)     # (B, 2, N, M) f32
    return _radar_preproc_tiled(xri, detection_type, tile)


def _reference(x: jax.Array, detection_type: str = "range") -> jax.Array:
    """Pure-JAX reference mirroring the PyTorch forward."""
    xc = x.astype(jnp.complex64)
    x0 = jnp.transpose(xc, (0, 2, 1)) if detection_type == "range" else xc
    x_mean = jnp.mean(x0, axis=1, keepdims=True)
    x1 = x0 - x_mean
    return jnp.concatenate([jnp.real(x1), jnp.imag(x1)], axis=-1)


if __name__ == "__main__":
    key = jax.random.PRNGKey(0)

    def make_input(k, b, n, m):
        k_re, k_im = jax.random.split(k)
        x_re = jax.random.normal(k_re, (b, n, m), dtype=jnp.float32)
        x_im = jax.random.normal(k_im, (b, n, m), dtype=jnp.float32)
        return (x_re + 1j * x_im).astype(jnp.complex64)

    ok = True
    cases = [
        (2, 128, 256),   # aligned radar cube -> tiled, fused-transpose fast path
        (2, 8, 16),      # unaligned -> whole-slice fallback path
    ]
    for idx, (b, n, m) in enumerate(cases):
        x = make_input(jax.random.fold_in(key, idx), b, n, m)
        for det in ("range", "doppler"):
            out = jax.block_until_ready(radar_preprocessing(x, detection_type=det))
            ref = jax.block_until_ready(_reference(x, detection_type=det))
            if out.shape != ref.shape or not bool(
                    jnp.allclose(out, ref, atol=1e-5, rtol=1e-5)):
                ok = False

    print("KERNEL_OK" if ok else "KERNEL_MISMATCH")
</pallas_src>

<mosaic_0001>
module attributes {stable_mosaic.version = 11 : i64} {
  func.func @_center_tile_kernel(%arg0: i32, %arg1: i32, %arg2: i32, %arg3: memref<1x1x128x256xf32, #tpu.memory_space<vmem>>, %arg4: memref<1x256x128xf32, #tpu.memory_space<vmem>>) attributes {dimension_semantics = [#tpu.dimension_semantics<parallel>, #tpu.dimension_semantics<parallel>, #tpu.dimension_semantics<parallel>], iteration_bounds = array<i64: 2, 2, 1>, scalar_prefetch = 0 : i64, scratch_operands = 0 : i64, tpu.core_type = #tpu.core_type<tc>, window_params = [{transform_indices = @transform_0, window_bounds = array<i64: 1, 1, 128, 256>}, {transform_indices = @transform_1, window_bounds = array<i64: 1, 256, 128>}]} {
    %c0 = arith.constant 0 : index
    %c0_0 = arith.constant 0 : index
    %c0_1 = arith.constant 0 : index
    %c0_2 = arith.constant 0 : index
    %0 = vector.load %arg3[%c0, %c0_0, %c0_1, %c0_2] : memref<1x1x128x256xf32, #tpu.memory_space<vmem>>, vector<1x1x128x256xf32>
    %1 = vector.shape_cast %0 : vector<1x1x128x256xf32> to vector<128x256xf32>
    %cst = arith.constant dense<0.000000e+00> : vector<128xf32>
    %2 = vector.multi_reduction <add>, %1, %cst [1] : vector<128x256xf32> to vector<128xf32>
    %3 = vector.shape_cast %2 : vector<128xf32> to vector<128x1xf32>
    %cst_3 = arith.constant 3.906250e-03 : f32
    %4 = vector.broadcast %cst_3 : f32 to vector<128x1xf32>
    %5 = arith.mulf %3, %4 : vector<128x1xf32>
    %6 = vector.broadcast %5 : vector<128x1xf32> to vector<128x256xf32>
    %7 = arith.subf %1, %6 : vector<128x256xf32>
    %8 = tpu.transpose %7, [1, 0] : vector<128x256xf32> -> vector<256x128xf32>
    %c0_4 = arith.constant 0 : index
    %c0_5 = arith.constant 0 : index
    %c0_6 = arith.constant 0 : index
    %9 = vector.load %arg4[%c0_4, %c0_5, %c0_6] : memref<1x256x128xf32, #tpu.memory_space<vmem>>, vector<1x256x128xf32>
    %10 = vector.shape_cast %9 : vector<1x256x128xf32> to vector<256x128xf32>
    %11 = vector.shape_cast %8 : vector<256x128xf32> to vector<1x256x128xf32>
    tpu.vector_store %arg4[%c0_4, %c0_5, %c0_6], %11 {strides = array<i32>} : memref<1x256x128xf32, #tpu.memory_space<vmem>>, vector<1x256x128xf32>,
    return
  }
  func.func @transform_0(%arg0: i32, %arg1: i32, %arg2: i32) -> (i32, i32, i32, i32) {
    %c0_i32 = arith.constant 0 : i32
    %c0_i32_0 = arith.constant 0 : i32
    return %arg0, %arg1, %arg2, %c0_i32 : i32, i32, i32, i32
  }
  func.func @transform_1(%arg0: i32, %arg1: i32, %arg2: i32) -> (i32, i32, i32) {
    %c1_i32 = arith.constant 1 : i32
    %0 = arith.muli %arg1, %c1_i32 : i32
    %1 = arith.addi %0, %arg2 : i32
    %c0_i32 = arith.constant 0 : i32
    %c0_i32_0 = arith.constant 0 : i32
    return %arg0, %c0_i32, %1 : i32, i32, i32
  }
}

</mosaic_0001>

<bundles_post_ra>
// kernel: tpu_custom_call.1
= control target key start
LH: loop header
LB: loop body
LE: loop exit
PB: predicated region body
PF: predicated region fallthrough
CT: control target
= control target key end

     0   :  { %6 = vsyncpa [#allocation3], 0  ;;  %s1146_s0 = inlined_call_operand.hbm [shape: f32[2,2,128,256], index: 0, kind: input, shape index: {}]   ;;  %s1147_s1 = inlined_call_operand.hbm [shape: f32[2,256,256], index: 1, kind: output, shape index: {}]  }
   0x1   :  { %8 = vsyncpa [#allocation3 + $0x1], 0 }
   0x2   :  { %9 = vsyncpa [#allocation4], 0 }
   0x3   :  { %11 = vsyncpa [#allocation4 + $0x1], 0  ;;  %s750_s6 = smov 0   ;;  %s752_s7 = smov 0  }
   0x4   :  { %s754_s8 = smov 0   ;;  %s756_s9 = smov 0  }
   0x5   :  { %s758_s10 = smov 0   ;;  %s760_s11 = smov 0  }
   0x6   :  { %s762_s12 = smov 0   ;;  %s764_s13 = smov 0  }
   0x7 LB: > { %s504_s14 = sadd.s32 4294967295, %s731_s13   ;;  %s505_s15 = sadd.s32 4294967294, %s731_s13   ;;  %s731_s13 = sphi %s764_s13, %s17_s13   ;;  %s727_s12 = sphi %s762_s12, %s1162_s12   ;;  %s723_s11 = sphi %s760_s11, %s1161_s11   ;;  %s719_s10 = sphi %s758_s10, %s1160_s10   ;;  %s715_s9 = sphi %s756_s9, %s1159_s9   ;;  %s711_s8 = sphi %s754_s8, %s1158_s8   ;;  %s707_s7 = sphi %s752_s7, %s1157_s7   ;;  %s703_s6 = sphi %s750_s6, %s1156_s6  }
   0x8   : > { %s32_s16 = sadd.s32 1, %s723_s11  ;;  %s36_s17 = sadd.s32 1, %s727_s12 }
   0x9   : > { %p34_p0 = scmp.ge.s32.totalorder %s32_s16, 2  ;;  %s47_s18 = sadd.s32 1, %s711_s8 }
   0xa   : > { %p54_p1 = scmp.ne.s32.totalorder %s711_s8, %s707_s7  ;;  %p55_p2 = scmp.eq.s32.totalorder %s731_s13, 0 }
   0xb   : > { %s1164_s16 = smov (%p34_p0, %s32_s16), 0  ;;  %s1166_s17 = smov (!%p34_p0, %s36_s17), %s727_s12 }
   0xc   : > { %s41_s19 = ssub.s32 %s723_s11, %s1164_s16  ;;  %p803_p3 = por %p55_p2, %p54_p1 }
   0xd   : > { %p38_p4 = scmp.ge.s32.totalorder %s1166_s17, 2  ;;  %p60_p5 = scmp.ne.s32.totalorder %s707_s7, %s703_s6 }
   0xe   : > { %p61_p6 = scmp.eq.s32.totalorder %s504_s14, 0  ;;  %p88_p7 = scmp.eq.s32.totalorder %s504_s14, 3 }
   0xf   : > { %s1168_s17 = smov (%p38_p4, %s1166_s17), 0  ;;  %p94_p10 = scmp.eq.s32.totalorder %s505_s15, 3 }
  0x10   : > { %p811_p8 = por %p61_p6, %p60_p5  ;;  %p815_p9 = por %p88_p7, %p54_p1 }
  0x11   : > { %s40_s23 = ssub.s32 %s727_s12, %s1168_s17  ;;  %p821_p12 = por %p94_p10, %p60_p5 }
  0x12   : > { %s1151_s22 = scalar_select %p815_p9, 1, 0 }
  0x13   : > { %s42_s24 = sor.u32 %s41_s19, %s40_s23  ;;  %p532_p13 = scmp.lt.s32.totalorder %s731_s13, 4 }
  0x14   : > { %p45_p11 = scmp.eq.s32.totalorder %s42_s24, 0  ;;  %s114_s26 = sand.u32 1, %s711_s8  }
  0x15   : > { %s1152_s25 = scalar_select %p821_p12, 1, 0 }
  0x16   : > { %s828_s27 = scalar_select %p45_p11, %s711_s8, %s47_s18  }
  0x17   : > { %s508_s28 = sshll.u32 %s114_s26, 8  ;;  %s509_s29 = sshll.u32 %s723_s11, 5 }
  0x18   : > { %s510_s30 = sshll.u32 %s727_s12, 6  ;;  %s118_s2 = scalar_lea.vmem [#allocation2], %s508_s28 }
  0x19   : > { %s130_s3 = sshll.u32 %s118_s2, 4  ;;  %s127_s4 = sadd.s32 %s510_s30, %s509_s29  ;;  %s832_s3 = int_to_ptr.vmem [resolvable:$true] %s130_s3 }
  0x1a   : > { %s511_s5 = sshll.u32 %s127_s4, 7  ;;  %p836_p0 = pnand %p532_p13, %p803_p3 }
  0x1b   : > { %s843_s18 = scalar_lea.hbm %s1146_s0, %s511_s5  ;;  %s845_s23 = scalar_lea.sflag [#allocation3], %s114_s26 }
  0x1c   : > { %s603_s24 = scalar_lea.hbm %s843_s18, 4096  ;;  %p605_p2 = pneg %p836_p0 }
  0x1d   : > { %p604_p1 = scmp.ne.s32.totalorder %s843_s18, %s603_s24  ;;  %s608_s29 = scalar_lea.hbm %s1146_s0, 16384 }
  0x1e   : > { %p609_p5 = scmp.lt.u32.totalorder %s843_s18, %s1146_s0  ;;  %p610_p6 = scmp.lt.u32.totalorder %s608_s29, %s603_s24 }
  0x1f   : > { %p606_p3 = pnand %p605_p2, %p604_p1  ;;  %p612_p10 = scmp.lt.u32.totalorder %s603_s24, %s843_s18 }
  0x20   : > { %p611_p7 = por %p610_p6, %p609_p5 }
  0x21   : > { %p607_p4 = pneg %p606_p3 }
  0x22   : > { %p613_p11 = por %p612_p10, %p611_p7 }
  0x24   : > { %p614_p13 = pnand %p613_p11, %p607_p4 }
  0x26   : > { %617 = shalt.err (!%p614_p13)
}
  0x27   : > { %s618_s26 = scalar_lea.vmem %s832_s3, 4096  ;;  %s733_s4 = smov [#allocation2]  }
  0x28   : > { %p619_p1 = scmp.ne.s32.totalorder %s832_s3, %s618_s26  ;;  %s623_s5 = sshll.u32 %s733_s4, 4  ;;  %s624_s5 = int_to_ptr.vmem [resolvable:$false] %s623_s5 }
  0x29   : > { %s625_s15 = scalar_lea.vmem %s624_s5, 8192  ;;  %p626_p9 = scmp.lt.s32.totalorder %s832_s3, %s624_s5 }
  0x2a   : > { %p621_p3 = pnand %p619_p1, %p605_p2  ;;  %p627_p5 = scmp.lt.s32.totalorder %s625_s15, %s618_s26 }
  0x2c   : > { %p622_p12 = pneg %p621_p3  ;;  %p628_p6 = por %p627_p5, %p626_p9 }
  0x2e   : > { %p629_p7 = pnand %p628_p6, %p622_p12 }
  0x30   : > { %632 = shalt.err (!%p629_p7)
}
  0x31   : > { %s734_s19 = smov 256   ;;  %s735_s24 = smov 16  }
  0x32   : > { %527 = dma.hbm_to_vmem [thread:$0]  (!%p836_p0), %s843_s18, 4096, %s832_s3, %s845_s23, %s734_s19, %s734_s19, %s735_s24  }
  0x33   : > { %p512_p2 = scmp.ge.s32.totalorder %s731_s13, 1  ;;  %p138_p4 = scmp.lt.s32.totalorder %s731_s13, 5 }
  0x35   : > { %p139_p10 = pnand %p512_p2, %p138_p4 }
  0x36   : > { %s876_s20 = sand.u32 (!%p139_p10), 1, %s707_s7  }
  0x37   : > { %142 = sbr.rel (%p139_p10) target bundleno = 417 (0x1a1), region = 24  ;;  %s513_s28 = sshll.u32 (!%p139_p10), %s876_s20, 8 }
  0x38   : > { %s145_s29 = scalar_lea.sflag (!%p139_p10), [#allocation3], %s876_s20  ;;  %s882_s30 = scalar_lea.vmem (!%p139_p10), [#allocation2], %s513_s28 }
  0x3e   : > { %694 = dma.done.wait (%p811_p8), %s145_s29, 4096  }
  0x3f   : > { %696 = vsyncadd (%p811_p8), %s145_s29, 4294963200  ;;  %v889_v0 = vld [vmem:[%s882_s30] sm:$0xff]  ;;  %v892_v1 = vld [vmem:[%s882_s30 + $0x8] sm:$0xff]  ;;  %s1050_s21 = scalar_lea.vmem [#allocation5], %s513_s28  ;;  %s516_s3 = sshll.u32 %s719_s10, 6 }
  0x40   : > { %v895_v2 = vld [vmem:[%s882_s30 + $0x10] sm:$0xff]  ;;  %v201_v3 = vadd.f32 %v892_v1, %v889_v0  ;;  %v900_v4 = vld [vmem:[%s882_s30 + $0x18] sm:$0xff]  ;;  %v903_v5 = vld [vmem:[%s882_s30 + $0x20] sm:$0xff]  ;;  %s406_s14 = sadd.s32 %s715_s9, %s516_s3  ;;  %s409_s23 = sshll.u32 %s1050_s21, 4  ;;  %s1090_s23 = int_to_ptr.vmem [resolvable:$true] %s409_s23 }
  0x41   : > { %v906_v6 = vld [vmem:[%s882_s30 + $0x28] sm:$0xff]  ;;  %v911_v8 = vld [vmem:[%s882_s30 + $0x30] sm:$0xff]  ;;  %v914_v9 = vld [vmem:[%s882_s30 + $0x38] sm:$0xff]  ;;  %v204_v10 = vadd.f32 %v900_v4, %v895_v2  ;;  %s517_s18 = sshll.u32 %s406_s14, 7  ;;  %s394_s9 = scalar_lea.sflag [#allocation4], %s876_s20 }
  0x42   : > { %v207_v7 = vadd.f32 %v906_v6, %v903_v5  ;;  %202 = vadd.xlane.f32.xlu0 %v201_v3  ;;  %v210_v11 = vadd.f32 %v914_v9, %v911_v8  ;;  %v921_v12 = vld [vmem:[%s882_s30 + $0x40] sm:$0xff]  ;;  %v924_v13 = vld [vmem:[%s882_s30 + $0x48] sm:$0xff]  ;;  %v927_v14 = vld [vmem:[%s882_s30 + $0x50] sm:$0xff]  ;;  %s1088_s10 = scalar_lea.hbm %s1147_s1, %s517_s18  ;;  %s633_s4 = scalar_lea.vmem %s1090_s23, 4096 }
  0x43   : > { %v930_v15 = vld [vmem:[%s882_s30 + $0x58] sm:$0xff]  ;;  %v213_v16 = vadd.f32 %v924_v13, %v921_v12  ;;  %v937_v18 = vld [vmem:[%s882_s30 + $0x60] sm:$0xff]  ;;  %v940_v19 = vld [vmem:[%s882_s30 + $0x68] sm:$0xff]  ;;  %p634_p8 = scmp.ne.s32.totalorder %s1090_s23, %s633_s4  ;;  %p1154_p9 = scmp.ne.s32.totalorder %s1151_s22, 0 }
  0x44   : > { %208 = vadd.xlane.f32.xlu1 %v207_v7  ;;  %v216_v17 = vadd.f32 %v930_v15, %v927_v14  ;;  %v943_v20 = vld [vmem:[%s882_s30 + $0x70] sm:$0xff]  ;;  %v946_v21 = vld [vmem:[%s882_s30 + $0x78] sm:$0xff]  ;;  %v219_v22 = vadd.f32 %v940_v19, %v937_v18  ;;  %v953_v24 = vld [vmem:[%s882_s30 + $0x80] sm:$0xff]  ;;  %s736_s5 = smov [#allocation5]  }
  0x45   : > { %v222_v23 = vadd.f32 %v946_v21, %v943_v20  ;;  %v956_v25 = vld [vmem:[%s882_s30 + $0x88] sm:$0xff]  ;;  %v959_v26 = vld [vmem:[%s882_s30 + $0x90] sm:$0xff]  ;;  %v962_v27 = vld [vmem:[%s882_s30 + $0x98] sm:$0xff]  ;;  %p635_p12 = pnand %p634_p8, %p1154_p9  ;;  %s637_s15 = sshll.u32 %s736_s5, 4  ;;  %s638_s15 = int_to_ptr.vmem [resolvable:$false] %s637_s15 }
  0x46   : > { %205 = vadd.xlane.f32.xlu0 %v204_v10  ;;  %v225_v28 = vadd.f32 %v956_v25, %v953_v24  ;;  %v228_v29 = vadd.f32 %v962_v27, %v959_v26  ;;  %v969_v30 = vld [vmem:[%s882_s30 + $0xa0] sm:$0xff]  ;;  %v972_v31 = vld [vmem:[%s882_s30 + $0xa8] sm:$0xff]  ;;  %v975_v32 = vld [vmem:[%s882_s30 + $0xb0] sm:$0xff]  ;;  %s639_s19 = scalar_lea.vmem %s638_s15, 8192  ;;  %p640_p11 = scmp.lt.s32.totalorder %s1090_s23, %s638_s15 }
  0x47   : > { %v978_v33 = vld [vmem:[%s882_s30 + $0xb8] sm:$0xff]  ;;  %v231_v34 = vadd.f32 %v972_v31, %v969_v30  ;;  %v985_v36 = vld [vmem:[%s882_s30 + $0xc0] sm:$0xff]  ;;  %v988_v37 = vld [vmem:[%s882_s30 + $0xc8] sm:$0xff]  ;;  %p636_p0 = pneg %p635_p12  ;;  %p641_p13 = scmp.lt.s32.totalorder %s639_s19, %s633_s4 }
  0x48   : > { %211 = vadd.xlane.f32.xlu1 %v210_v11  ;;  %v234_v35 = vadd.f32 %v978_v33, %v975_v32  ;;  %v991_v38 = vld [vmem:[%s882_s30 + $0xd0] sm:$0xff]  ;;  %v994_v39 = vld [vmem:[%s882_s30 + $0xd8] sm:$0xff]  ;;  %v237_v40 = vadd.f32 %v988_v37, %v985_v36  ;;  %v1001_v42 = vld [vmem:[%s882_s30 + $0xe0] sm:$0xff] }
  0x49   : > { %v240_v41 = vadd.f32 %v994_v39, %v991_v38  ;;  %v1004_v43 = vld [vmem:[%s882_s30 + $0xe8] sm:$0xff]  ;;  %v1007_v44 = vld [vmem:[%s882_s30 + $0xf0] sm:$0xff]  ;;  %v1010_v45 = vld [vmem:[%s882_s30 + $0xf8] sm:$0xff]  ;;  %p642_p1 = por %p641_p13, %p640_p11 }
  0x4a   : > { %214 = vadd.xlane.f32.xlu0 %v213_v16  ;;  %v243_v46 = vadd.f32 %v1004_v43, %v1001_v42  ;;  %v246_v47 = vadd.f32 %v1010_v45, %v1007_v44 }
  0x4b   : > { %p643_p3 = pnand %p642_p1, %p636_p0 }
  0x4c   : > { %217 = vadd.xlane.f32.xlu1 %v216_v17 }
  0x4e   : > { %220 = vadd.xlane.f32.xlu0 %v219_v22 }
  0x50   : > { %223 = vadd.xlane.f32.xlu1 %v222_v23 }
  0x52   : > { %226 = vadd.xlane.f32.xlu0 %v225_v28 }
  0x54   : > { %229 = vadd.xlane.f32.xlu1 %v228_v29 }
  0x56   : > { %232 = vadd.xlane.f32.xlu0 %v231_v34 }
  0x58   : > { %235 = vadd.xlane.f32.xlu1 %v234_v35 }
  0x5a   : > { %238 = vadd.xlane.f32.xlu0 %v237_v40 }
  0x5c   : > { %241 = vadd.xlane.f32.xlu1 %v240_v41 }
  0x5e   : > { %244 = vadd.xlane.f32.xlu0 %v243_v46 }
  0x60   : > { %247 = vadd.xlane.f32.xlu1 %v246_v47 }
  0xcf   : > { %v203_v48 = vpop.xlane.xlu0 %202 }
  0xd0   : > { %v249_v49 = vmul.f32 0.00390625, %v203_v48 }
  0xd1   : > { %v209_v50 = vpop.xlane.xlu1 %208 }
  0xd2   : > { %v266_v51 = vsub.f32 %v892_v1, %v249_v49  ;;  %v265_v52 = vsub.f32 %v889_v0, %v249_v49  ;;  %v251_v55 = vmul.f32 0.00390625, %v209_v50 }
  0xd3   : > { %v206_v53 = vpop.xlane.xlu0 %205 }
  0xd4   : > { %v250_v54 = vmul.f32 0.00390625, %v206_v53  ;;  %329 = vxpose.xlu1.b32.start [1/16] %v266_v51, 128  ;;  %297 = vxpose.xlu0.b32.start [1/16] %v265_v52, 128  ;;  %v269_v59 = vsub.f32 %v903_v5, %v251_v55  ;;  %v270_v60 = vsub.f32 %v906_v6, %v251_v55 }
  0xd5   : > { %v212_v56 = vpop.xlane.xlu1 %211 }
  0xd6   : > { %v267_v57 = vsub.f32 %v895_v2, %v250_v54  ;;  %v268_v58 = vsub.f32 %v900_v4, %v250_v54  ;;  %v252_v61 = vmul.f32 0.00390625, %v212_v56 }
  0xd7   : > { %v215_v62 = vpop.xlane.xlu0 %214 }
  0xd8   : > { %330 = vxpose.xlu1.b32.cont [2/16] %v268_v58, 128  ;;  %298 = vxpose.xlu0.b32.cont [2/16] %v267_v57, 128  ;;  %v271_v63 = vsub.f32 %v911_v8, %v252_v61  ;;  %v272_v0 = vsub.f32 %v914_v9, %v252_v61  ;;  %v253_v1 = vmul.f32 0.00390625, %v215_v62 }
  0xd9   : > { %v218_v3 = vpop.xlane.xlu1 %217 }
  0xda   : > { %v273_v2 = vsub.f32 %v921_v12, %v253_v1  ;;  %v274_v4 = vsub.f32 %v924_v13, %v253_v1  ;;  %v254_v5 = vmul.f32 0.00390625, %v218_v3 }
  0xdb   : > { %v221_v6 = vpop.xlane.xlu0 %220 }
  0xdc   : > { %331 = vxpose.xlu1.b32.cont [3/16] %v270_v60, 128  ;;  %299 = vxpose.xlu0.b32.cont [3/16] %v269_v59, 128  ;;  %v275_v7 = vsub.f32 %v927_v14, %v254_v5  ;;  %v276_v10 = vsub.f32 %v930_v15, %v254_v5  ;;  %v255_v8 = vmul.f32 0.00390625, %v221_v6 }
  0xdd   : > { %v224_v9 = vpop.xlane.xlu1 %223 }
  0xde   : > { %v277_v11 = vsub.f32 %v937_v18, %v255_v8  ;;  %v278_v16 = vsub.f32 %v940_v19, %v255_v8  ;;  %v256_v12 = vmul.f32 0.00390625, %v224_v9 }
  0xdf   : > { %v227_v13 = vpop.xlane.xlu0 %226 }
  0xe0   : > { %332 = vxpose.xlu1.b32.cont [4/16] %v272_v0, 128  ;;  %300 = vxpose.xlu0.b32.cont [4/16] %v271_v63, 128  ;;  %v279_v17 = vsub.f32 %v943_v20, %v256_v12  ;;  %v280_v22 = vsub.f32 %v946_v21, %v256_v12  ;;  %v257_v14 = vmul.f32 0.00390625, %v227_v13 }
  0xe1   : > { %v230_v15 = vpop.xlane.xlu1 %229 }
  0xe2   : > { %v281_v23 = vsub.f32 %v953_v24, %v257_v14  ;;  %v282_v28 = vsub.f32 %v956_v25, %v257_v14  ;;  %v258_v18 = vmul.f32 0.00390625, %v230_v15 }
  0xe3   : > { %v233_v19 = vpop.xlane.xlu0 %232 }
  0xe4   : > { %333 = vxpose.xlu1.b32.cont [5/16] %v274_v4, 128  ;;  %301 = vxpose.xlu0.b32.cont [5/16] %v273_v2, 128  ;;  %v283_v29 = vsub.f32 %v959_v26, %v258_v18  ;;  %v284_v34 = vsub.f32 %v962_v27, %v258_v18  ;;  %v259_v20 = vmul.f32 0.00390625, %v233_v19 }
  0xe5   : > { %v236_v21 = vpop.xlane.xlu1 %235 }
  0xe6   : > { %v285_v35 = vsub.f32 %v969_v30, %v259_v20  ;;  %v286_v40 = vsub.f32 %v972_v31, %v259_v20  ;;  %v260_v24 = vmul.f32 0.00390625, %v236_v21 }
  0xe7   : > { %v239_v25 = vpop.xlane.xlu0 %238 }
  0xe8   : > { %334 = vxpose.xlu1.b32.cont [6/16] %v276_v10, 128  ;;  %302 = vxpose.xlu0.b32.cont [6/16] %v275_v7, 128  ;;  %v287_v41 = vsub.f32 %v975_v32, %v260_v24  ;;  %v288_v46 = vsub.f32 %v978_v33, %v260_v24  ;;  %v261_v26 = vmul.f32 0.00390625, %v239_v25 }
  0xe9   : > { %v242_v27 = vpop.xlane.xlu1 %241 }
  0xea   : > { %v289_v47 = vsub.f32 %v985_v36, %v261_v26  ;;  %v290_v48 = vsub.f32 %v988_v37, %v261_v26  ;;  %v262_v30 = vmul.f32 0.00390625, %v242_v27 }
  0xeb   : > { %v245_v31 = vpop.xlane.xlu0 %244 }
  0xec   : > { %335 = vxpose.xlu1.b32.cont [7/16] %v278_v16, 128  ;;  %303 = vxpose.xlu0.b32.cont [7/16] %v277_v11, 128  ;;  %v291_v49 = vsub.f32 %v991_v38, %v262_v30  ;;  %v292_v50 = vsub.f32 %v994_v39, %v262_v30  ;;  %v263_v32 = vmul.f32 0.00390625, %v245_v31 }
  0xed   : > { %v248_v33 = vpop.xlane.xlu1 %247 }
  0xee   : > { %v293_v51 = vsub.f32 %v1001_v42, %v263_v32  ;;  %v294_v52 = vsub.f32 %v1004_v43, %v263_v32  ;;  %v264_v36 = vmul.f32 0.00390625, %v248_v33 }
  0xf0   : > { %336 = vxpose.xlu1.b32.cont [8/16] %v280_v22, 128  ;;  %304 = vxpose.xlu0.b32.cont [8/16] %v279_v17, 128  ;;  %v295_v37 = vsub.f32 %v1007_v44, %v264_v36  ;;  %v296_v53 = vsub.f32 %v1010_v45, %v264_v36 }
  0xf4   : > { %337 = vxpose.xlu1.b32.cont [9/16] %v282_v28, 128  ;;  %305 = vxpose.xlu0.b32.cont [9/16] %v281_v23, 128 }
  0xf8   : > { %338 = vxpose.xlu1.b32.cont [10/16] %v284_v34, 128  ;;  %306 = vxpose.xlu0.b32.cont [10/16] %v283_v29, 128 }
  0xfc   : > { %339 = vxpose.xlu1.b32.cont [11/16] %v286_v40, 128  ;;  %307 = vxpose.xlu0.b32.cont [11/16] %v285_v35, 128 }
 0x100   : > { %340 = vxpose.xlu1.b32.cont [12/16] %v288_v46, 128  ;;  %308 = vxpose.xlu0.b32.cont [12/16] %v287_v41, 128 }
 0x104   : > { %341 = vxpose.xlu1.b32.cont [13/16] %v290_v48, 128  ;;  %309 = vxpose.xlu0.b32.cont [13/16] %v289_v47, 128 }
 0x108   : > { %342 = vxpose.xlu1.b32.cont [14/16] %v292_v50, 128  ;;  %310 = vxpose.xlu0.b32.cont [14/16] %v291_v49, 128 }
 0x10c   : > { %343 = vxpose.xlu1.b32.cont [15/16] %v294_v52, 128  ;;  %311 = vxpose.xlu0.b32.cont [15/16] %v293_v51, 128 }
 0x110   : > { %344 = vxpose.xlu1.b32.end [16/16] %v296_v53, 128  ;;  %312 = vxpose.xlu0.b32.end [16/16] %v295_v37, 128 }
 0x154   : > { %v345_v38 = vpop.trf.xlu1  ;;  %v313_v39 = vpop.trf.xlu0 }
 0x155   : > { %377 = vst [vmem:[%s1050_s21 + $0x80] sm:$0xff] %v345_v38  ;;  %361 = vst [vmem:[%s1050_s21] sm:$0xff] %v313_v39 }
 0x158   : > { %v346_v42 = vpop.trf.xlu1  ;;  %v314_v43 = vpop.trf.xlu0 }
 0x159   : > { %378 = vst [vmem:[%s1050_s21 + $0x88] sm:$0xff] %v346_v42  ;;  %362 = vst [vmem:[%s1050_s21 + $0x8] sm:$0xff] %v314_v43 }
 0x15c   : > { %v347_v44 = vpop.trf.xlu1  ;;  %v315_v45 = vpop.trf.xlu0 }
 0x15d   : > { %379 = vst [vmem:[%s1050_s21 + $0x90] sm:$0xff] %v347_v44  ;;  %363 = vst [vmem:[%s1050_s21 + $0x10] sm:$0xff] %v315_v45 }
 0x160   : > { %v348_v54 = vpop.trf.xlu1  ;;  %v316_v55 = vpop.trf.xlu0 }
 0x161   : > { %380 = vst [vmem:[%s1050_s21 + $0x98] sm:$0xff] %v348_v54  ;;  %364 = vst [vmem:[%s1050_s21 + $0x18] sm:$0xff] %v316_v55 }
 0x164   : > { %v349_v56 = vpop.trf.xlu1  ;;  %v317_v57 = vpop.trf.xlu0 }
 0x165   : > { %381 = vst [vmem:[%s1050_s21 + $0xa0] sm:$0xff] %v349_v56  ;;  %365 = vst [vmem:[%s1050_s21 + $0x20] sm:$0xff] %v317_v57 }
 0x168   : > { %v350_v58 = vpop.trf.xlu1  ;;  %v318_v59 = vpop.trf.xlu0 }
 0x169   : > { %382 = vst [vmem:[%s1050_s21 + $0xa8] sm:$0xff] %v350_v58  ;;  %366 = vst [vmem:[%s1050_s21 + $0x28] sm:$0xff] %v318_v59 }
 0x16c   : > { %v351_v60 = vpop.trf.xlu1  ;;  %v319_v61 = vpop.trf.xlu0 }
 0x16d   : > { %383 = vst [vmem:[%s1050_s21 + $0xb0] sm:$0xff] %v351_v60  ;;  %367 = vst [vmem:[%s1050_s21 + $0x30] sm:$0xff] %v319_v61 }
 0x170   : > { %v352_v62 = vpop.trf.xlu1  ;;  %v320_v63 = vpop.trf.xlu0 }
 0x171   : > { %384 = vst [vmem:[%s1050_s21 + $0xb8] sm:$0xff] %v352_v62  ;;  %368 = vst [vmem:[%s1050_s21 + $0x38] sm:$0xff] %v320_v63 }
 0x174   : > { %v353_v0 = vpop.trf.xlu1  ;;  %v321_v1 = vpop.trf.xlu0 }
 0x175   : > { %385 = vst [vmem:[%s1050_s21 + $0xc0] sm:$0xff] %v353_v0  ;;  %369 = vst [vmem:[%s1050_s21 + $0x40] sm:$0xff] %v321_v1 }
 0x178   : > { %v354_v3 = vpop.trf.xlu1  ;;  %v322_v2 = vpop.trf.xlu0 }
 0x179   : > { %386 = vst [vmem:[%s1050_s21 + $0xc8] sm:$0xff] %v354_v3  ;;  %370 = vst [vmem:[%s1050_s21 + $0x48] sm:$0xff] %v322_v2 }
 0x17c   : > { %v355_v4 = vpop.trf.xlu1  ;;  %v323_v5 = vpop.trf.xlu0 }
 0x17d   : > { %387 = vst [vmem:[%s1050_s21 + $0xd0] sm:$0xff] %v355_v4  ;;  %371 = vst [vmem:[%s1050_s21 + $0x50] sm:$0xff] %v323_v5 }
 0x180   : > { %v356_v6 = vpop.trf.xlu1  ;;  %v324_v7 = vpop.trf.xlu0 }
 0x181   : > { %388 = vst [vmem:[%s1050_s21 + $0xd8] sm:$0xff] %v356_v6  ;;  %372 = vst [vmem:[%s1050_s21 + $0x58] sm:$0xff] %v324_v7 }
 0x184   : > { %v357_v10 = vpop.trf.xlu1  ;;  %v325_v8 = vpop.trf.xlu0 }
 0x185   : > { %389 = vst [vmem:[%s1050_s21 + $0xe0] sm:$0xff] %v357_v10  ;;  %373 = vst [vmem:[%s1050_s21 + $0x60] sm:$0xff] %v325_v8 }
 0x188   : > { %v358_v9 = vpop.trf.xlu1  ;;  %v326_v11 = vpop.trf.xlu0 }
 0x189   : > { %390 = vst [vmem:[%s1050_s21 + $0xe8] sm:$0xff] %v358_v9  ;;  %374 = vst [vmem:[%s1050_s21 + $0x68] sm:$0xff] %v326_v11 }
 0x18c   : > { %v359_v16 = vpop.trf.xlu1  ;;  %v327_v12 = vpop.trf.xlu0 }
 0x18d   : > { %391 = vst [vmem:[%s1050_s21 + $0xf0] sm:$0xff] %v359_v16  ;;  %375 = vst [vmem:[%s1050_s21 + $0x70] sm:$0xff] %v327_v12 }
 0x190   : > { %v360_v13 = vpop.trf.xlu1  ;;  %v328_v17 = vpop.trf.xlu0 }
 0x191   : > { %392 = vst [vmem:[%s1050_s21 + $0xf8] sm:$0xff] %v360_v13  ;;  %376 = vst [vmem:[%s1050_s21 + $0x78] sm:$0xff] %v328_v17 }
 0x192   : > { %646 = shalt.err (!%p643_p3)
}
 0x193   : > { %s647_s24 = scalar_lea.hbm %s1088_s10, 4096  ;;  %s651_s30 = scalar_lea.hbm %s1147_s1, 16384 }
 0x194   : > { %p648_p5 = scmp.ne.s32.totalorder %s1088_s10, %s647_s24  ;;  %p652_p2 = scmp.lt.u32.totalorder %s1088_s10, %s1147_s1 }
 0x195   : > { %p653_p4 = scmp.lt.u32.totalorder %s651_s30, %s647_s24  ;;  %p655_p8 = scmp.lt.u32.totalorder %s647_s24, %s1088_s10 }
 0x196   : > { %p649_p6 = pnand %p648_p5, %p1154_p9 }
 0x197   : > { %p654_p10 = por %p653_p4, %p652_p2 }
 0x198   : > { %p650_p7 = pneg %p649_p6 }
 0x199   : > { %p656_p12 = por %p655_p8, %p654_p10 }
 0x19b   : > { %p657_p0 = pnand %p656_p12, %p650_p7 }
 0x19d   : > { %660 = shalt.err (!%p657_p0)
}
 0x19e   : > { %s737_s14 = smov 128   ;;  %s738_s18 = smov 256  }
 0x19f   : > { %s739_s2 = smov 8  }
 0x1a0   : > { %522 = dma.vmem_to_hbm [thread:$0]  (%p1154_p9), %s1090_s23, 4096, %s1088_s10, %s394_s9, %s737_s14, %s738_s18, %s739_s2  }
 0x1a1 PF: > { %p533_p11 = scmp.ge.s32.totalorder %s731_s13, 2  ;;  %s424_s26 = sand.u32 1, %s703_s6  }
 0x1a2   : > { %p1155_p13 = scmp.ne.s32.totalorder %s1152_s25, 0  ;;  %s425_s4 = scalar_lea.sflag [#allocation4], %s424_s26 }
 0x1a4   : > { %p529_p1 = pnand %p533_p11, %p1155_p13 }
 0x1a6   : > { %698 = dma.done.wait (!%p529_p1), %s425_s4, 4096  }
 0x1a7   : > { %700 = vsyncadd (!%p529_p1), %s425_s4, 4294963200  ;;  %s17_s13 = sadd.s32 1, %s731_s13   ;;  %s1156_s6 = smov %s707_s7 }
 0x1a8   : > { %p14_p3 = scmp.ge.s32.totalorder %s17_s13, 6   ;;  %s1157_s7 = smov %s711_s8 }
 0x1a9   : > { %s1158_s8 = smov %s828_s27  ;;  %s1159_s9 = smov %s723_s11 }
 0x1aa   : > { %s1160_s10 = smov %s727_s12  ;;  %s1161_s11 = smov %s1164_s16 }
 0x1ab   : > { %s1162_s12 = smov %s1168_s17  ;;  %16 = sbr.rel (!%p14_p3) target bundleno = 7 (0x7), region = 69 }
 0x1b2   :  { %430 = vsyncpa [#allocation3], 1 }
 0x1b3   :  { %432 = vsyncpa [#allocation3 + $0x1], 1 }
 0x1b4   :  { %433 = vsyncpa [#allocation4], 1 }
 0x1b5   :  { %435 = vsyncpa [#allocation4 + $0x1], 1 }

</bundles_post_ra>
